<compile_context>
chip_gen: v7x
topology: tpu7x:2x2x1
jax: 0.10.0
libtpu: 0.0.40
codegen_flags: <defaults>
</compile_context>

<pallas_src>
import jax
import jax.numpy as jnp
from jax.experimental import pallas as pl
from jax.experimental.pallas import tpu as pltpu


def mlp_kernel(w1_ref, b1_ref, w2_ref, b2_ref, x_ref, o_ref):
    # w1_ref: (3,3) SMEM, b1_ref: (3,) SMEM, w2_ref: (2,3) SMEM, b2_ref: (2,) SMEM
    # x_ref:  (3, TB) VMEM  (features on sublanes, batch on lanes)
    # o_ref:  (2, TB) VMEM
    x = x_ref[...]                       # (3, TB) f32
    x0 = x[0:1, :]
    x1 = x[1:2, :]
    x2 = x[2:3, :]

    # fc1 + ReLU: 9 broadcast-FMAs on the VPU (PyTorch weight layout: w[out, in])
    h0 = w1_ref[0, 0] * x0 + w1_ref[0, 1] * x1 + w1_ref[0, 2] * x2 + b1_ref[0]
    h1 = w1_ref[1, 0] * x0 + w1_ref[1, 1] * x1 + w1_ref[1, 2] * x2 + b1_ref[1]
    h2 = w1_ref[2, 0] * x0 + w1_ref[2, 1] * x1 + w1_ref[2, 2] * x2 + b1_ref[2]
    h0 = jnp.maximum(h0, 0.0)
    h1 = jnp.maximum(h1, 0.0)
    h2 = jnp.maximum(h2, 0.0)

    # fc2: 6 broadcast-FMAs
    z0 = w2_ref[0, 0] * h0 + w2_ref[0, 1] * h1 + w2_ref[0, 2] * h2 + b2_ref[0]
    z1 = w2_ref[1, 0] * h0 + w2_ref[1, 1] * h1 + w2_ref[1, 2] * h2 + b2_ref[1]

    # 2-class softmax, fully elementwise (no cross-lane reductions):
    # VPU max/add, EUP exp, exact reciprocal (approx=False to hold 1e-5 tol).
    m = jnp.maximum(z0, z1)
    e0 = jnp.exp(z0 - m)
    e1 = jnp.exp(z1 - m)
    inv = pl.reciprocal(e0 + e1, approx=False)

    o_ref[...] = jnp.concatenate([e0 * inv, e1 * inv], axis=0)  # (2, TB)


def mlp_forward(x, w1, b1, w2, b2, *, tb_max=2048):
    """x: (B, 3) f32.  w1: (3,3), b1: (3,), w2: (2,3), b2: (2,) — PyTorch layout.

    Returns softmax(relu(x @ w1.T + b1) @ w2.T + b2) as (B, 2) f32.
    """
    B = x.shape[0]
    x = jnp.asarray(x, jnp.float32)
    w1 = jnp.asarray(w1, jnp.float32)
    b1 = jnp.asarray(b1, jnp.float32)
    w2 = jnp.asarray(w2, jnp.float32)
    b2 = jnp.asarray(b2, jnp.float32)

    # Lane-dense transposed layout: batch on the lane (last) axis.
    xt = x.T                                                # (3, B)

    # Pick a lane tile (multiple of 128), pad batch to a multiple of it.
    tb = min(tb_max, max(128, ((B + 127) // 128) * 128))
    bp = ((B + tb - 1) // tb) * tb
    if bp != B:
        xt = jnp.pad(xt, ((0, 0), (0, bp - B)))             # zero-pad lanes
    grid = (bp // tb,)

    smem = pltpu.MemorySpace.SMEM
    out_t = pl.pallas_call(
        mlp_kernel,
        out_shape=jax.ShapeDtypeStruct((2, bp), jnp.float32),
        grid=grid,
        in_specs=[
            pl.BlockSpec(memory_space=smem),                 # w1 (3,3)
            pl.BlockSpec(memory_space=smem),                 # b1 (3,)
            pl.BlockSpec(memory_space=smem),                 # w2 (2,3)
            pl.BlockSpec(memory_space=smem),                 # b2 (2,)
            pl.BlockSpec((3, tb), lambda i: (0, i)),         # x^T tile
        ],
        out_specs=pl.BlockSpec((2, tb), lambda i: (0, i)),   # out^T tile
        compiler_params=pltpu.CompilerParams(
            dimension_semantics=("parallel",),
        ),
        cost_estimate=pl.CostEstimate(
            flops=30 * bp,
            transcendentals=2 * bp,
            bytes_accessed=(3 + 2) * 4 * bp + 4 * 20,
        ),
    )(w1, b1, w2, b2, xt)

    # Back to PyTorch (batch, classes) layout; drop batch padding.
    return out_t[:, :B].T                                    # (B, 2)


def init_params(key):
    """Deterministic init mimicking PyTorch nn.Linear default (uniform +/- 1/sqrt(fan_in))."""
    k1, k2, k3, k4 = jax.random.split(key, 4)
    bound1 = 1.0 / jnp.sqrt(3.0)  # fan_in = 3
    w1 = jax.random.uniform(k1, (3, 3), jnp.float32, -bound1, bound1)  # (out, in)
    b1 = jax.random.uniform(k2, (3,), jnp.float32, -bound1, bound1)
    bound2 = 1.0 / jnp.sqrt(3.0)  # fan_in = 3
    w2 = jax.random.uniform(k3, (2, 3), jnp.float32, -bound2, bound2)  # (out, in)
    b2 = jax.random.uniform(k4, (2,), jnp.float32, -bound2, bound2)
    return w1, b1, w2, b2


def mlp_reference(x, w1, b1, w2, b2):
    h = jnp.maximum(x @ w1.T + b1, 0.0)
    z = h @ w2.T + b2
    return jax.nn.softmax(z, axis=1)


if __name__ == "__main__":
    key = jax.random.PRNGKey(0)
    kx, kp = jax.random.split(key)

    B = 8
    x = jax.random.normal(kx, (B, 3), jnp.float32)
    w1, b1, w2, b2 = init_params(kp)

    out = jax.block_until_ready(mlp_forward(x, w1, b1, w2, b2))
    ref = mlp_reference(x, w1, b1, w2, b2)

    assert out.shape == (B, 2)
    assert jnp.allclose(out, ref, atol=1e-5, rtol=1e-5)
    assert jnp.allclose(jnp.sum(out, axis=1), 1.0, atol=1e-5)

    print("KERNEL_OK")
</pallas_src>

<mosaic_0001>
module attributes {stable_mosaic.version = 11 : i64} {
  func.func @mlp_kernel(%arg0: i32, %arg1: memref<3x3xf32, #tpu.memory_space<smem>>, %arg2: memref<3xf32, #tpu.memory_space<smem>>, %arg3: memref<2x3xf32, #tpu.memory_space<smem>>, %arg4: memref<2xf32, #tpu.memory_space<smem>>, %arg5: memref<3x128xf32, #tpu.memory_space<vmem>>, %arg6: memref<2x128xf32, #tpu.memory_space<vmem>>) attributes {dimension_semantics = [#tpu.dimension_semantics<parallel>], iteration_bounds = array<i64: 1>, scalar_prefetch = 0 : i64, scratch_operands = 0 : i64, tpu.core_type = #tpu.core_type<tc>, window_params = [{transform_indices = @transform_0, window_bounds = array<i64: 3, 3>}, {transform_indices = @transform_1, window_bounds = array<i64: 3>}, {transform_indices = @transform_2, window_bounds = array<i64: 2, 3>}, {transform_indices = @transform_3, window_bounds = array<i64: 2>}, {transform_indices = @transform_4, window_bounds = array<i64: 3, 128>}, {transform_indices = @transform_5, window_bounds = array<i64: 2, 128>}]} {
    %c0 = arith.constant 0 : index
    %c0_0 = arith.constant 0 : index
    %0 = vector.load %arg5[%c0, %c0_0] : memref<3x128xf32, #tpu.memory_space<vmem>>, vector<3x128xf32>
    %1 = vector.extract_strided_slice %0 {offsets = [0, 0], sizes = [1, 128], strides = [1, 1]} : vector<3x128xf32> to vector<1x128xf32>
    %2 = vector.extract_strided_slice %0 {offsets = [1, 0], sizes = [1, 128], strides = [1, 1]} : vector<3x128xf32> to vector<1x128xf32>
    %3 = vector.extract_strided_slice %0 {offsets = [2, 0], sizes = [1, 128], strides = [1, 1]} : vector<3x128xf32> to vector<1x128xf32>
    %c0_1 = arith.constant 0 : index
    %c0_2 = arith.constant 0 : index
    %4 = memref.load %arg1[%c0_1, %c0_2] : memref<3x3xf32, #tpu.memory_space<smem>>
    %5 = vector.broadcast %4 : f32 to vector<1x128xf32>
    %6 = arith.mulf %5, %1 : vector<1x128xf32>
    %c0_3 = arith.constant 0 : index
    %c1 = arith.constant 1 : index
    %7 = memref.load %arg1[%c0_3, %c1] : memref<3x3xf32, #tpu.memory_space<smem>>
    %8 = vector.broadcast %7 : f32 to vector<1x128xf32>
    %9 = arith.mulf %8, %2 : vector<1x128xf32>
    %10 = arith.addf %6, %9 : vector<1x128xf32>
    %c0_4 = arith.constant 0 : index
    %c2 = arith.constant 2 : index
    %11 = memref.load %arg1[%c0_4, %c2] : memref<3x3xf32, #tpu.memory_space<smem>>
    %12 = vector.broadcast %11 : f32 to vector<1x128xf32>
    %13 = arith.mulf %12, %3 : vector<1x128xf32>
    %14 = arith.addf %10, %13 : vector<1x128xf32>
    %c0_5 = arith.constant 0 : index
    %15 = memref.load %arg2[%c0_5] : memref<3xf32, #tpu.memory_space<smem>>
    %16 = vector.broadcast %15 : f32 to vector<1x128xf32>
    %17 = arith.addf %14, %16 : vector<1x128xf32>
    %c1_6 = arith.constant 1 : index
    %c0_7 = arith.constant 0 : index
    %18 = memref.load %arg1[%c1_6, %c0_7] : memref<3x3xf32, #tpu.memory_space<smem>>
    %19 = vector.broadcast %18 : f32 to vector<1x128xf32>
    %20 = arith.mulf %19, %1 : vector<1x128xf32>
    %c1_8 = arith.constant 1 : index
    %c1_9 = arith.constant 1 : index
    %21 = memref.load %arg1[%c1_8, %c1_9] : memref<3x3xf32, #tpu.memory_space<smem>>
    %22 = vector.broadcast %21 : f32 to vector<1x128xf32>
    %23 = arith.mulf %22, %2 : vector<1x128xf32>
    %24 = arith.addf %20, %23 : vector<1x128xf32>
    %c1_10 = arith.constant 1 : index
    %c2_11 = arith.constant 2 : index
    %25 = memref.load %arg1[%c1_10, %c2_11] : memref<3x3xf32, #tpu.memory_space<smem>>
    %26 = vector.broadcast %25 : f32 to vector<1x128xf32>
    %27 = arith.mulf %26, %3 : vector<1x128xf32>
    %28 = arith.addf %24, %27 : vector<1x128xf32>
    %c1_12 = arith.constant 1 : index
    %29 = memref.load %arg2[%c1_12] : memref<3xf32, #tpu.memory_space<smem>>
    %30 = vector.broadcast %29 : f32 to vector<1x128xf32>
    %31 = arith.addf %28, %30 : vector<1x128xf32>
    %c2_13 = arith.constant 2 : index
    %c0_14 = arith.constant 0 : index
    %32 = memref.load %arg1[%c2_13, %c0_14] : memref<3x3xf32, #tpu.memory_space<smem>>
    %33 = vector.broadcast %32 : f32 to vector<1x128xf32>
    %34 = arith.mulf %33, %1 : vector<1x128xf32>
    %c2_15 = arith.constant 2 : index
    %c1_16 = arith.constant 1 : index
    %35 = memref.load %arg1[%c2_15, %c1_16] : memref<3x3xf32, #tpu.memory_space<smem>>
    %36 = vector.broadcast %35 : f32 to vector<1x128xf32>
    %37 = arith.mulf %36, %2 : vector<1x128xf32>
    %38 = arith.addf %34, %37 : vector<1x128xf32>
    %c2_17 = arith.constant 2 : index
    %c2_18 = arith.constant 2 : index
    %39 = memref.load %arg1[%c2_17, %c2_18] : memref<3x3xf32, #tpu.memory_space<smem>>
    %40 = vector.broadcast %39 : f32 to vector<1x128xf32>
    %41 = arith.mulf %40, %3 : vector<1x128xf32>
    %42 = arith.addf %38, %41 : vector<1x128xf32>
    %c2_19 = arith.constant 2 : index
    %43 = memref.load %arg2[%c2_19] : memref<3xf32, #tpu.memory_space<smem>>
    %44 = vector.broadcast %43 : f32 to vector<1x128xf32>
    %45 = arith.addf %42, %44 : vector<1x128xf32>
    %cst = arith.constant 0.000000e+00 : f32
    %46 = vector.broadcast %cst : f32 to vector<1x128xf32>
    %47 = arith.maximumf %17, %46 : vector<1x128xf32>
    %cst_20 = arith.constant 0.000000e+00 : f32
    %48 = vector.broadcast %cst_20 : f32 to vector<1x128xf32>
    %49 = arith.maximumf %31, %48 : vector<1x128xf32>
    %cst_21 = arith.constant 0.000000e+00 : f32
    %50 = vector.broadcast %cst_21 : f32 to vector<1x128xf32>
    %51 = arith.maximumf %45, %50 : vector<1x128xf32>
    %c0_22 = arith.constant 0 : index
    %c0_23 = arith.constant 0 : index
    %52 = memref.load %arg3[%c0_22, %c0_23] : memref<2x3xf32, #tpu.memory_space<smem>>
    %53 = vector.broadcast %52 : f32 to vector<1x128xf32>
    %54 = arith.mulf %53, %47 : vector<1x128xf32>
    %c0_24 = arith.constant 0 : index
    %c1_25 = arith.constant 1 : index
    %55 = memref.load %arg3[%c0_24, %c1_25] : memref<2x3xf32, #tpu.memory_space<smem>>
    %56 = vector.broadcast %55 : f32 to vector<1x128xf32>
    %57 = arith.mulf %56, %49 : vector<1x128xf32>
    %58 = arith.addf %54, %57 : vector<1x128xf32>
    %c0_26 = arith.constant 0 : index
    %c2_27 = arith.constant 2 : index
    %59 = memref.load %arg3[%c0_26, %c2_27] : memref<2x3xf32, #tpu.memory_space<smem>>
    %60 = vector.broadcast %59 : f32 to vector<1x128xf32>
    %61 = arith.mulf %60, %51 : vector<1x128xf32>
    %62 = arith.addf %58, %61 : vector<1x128xf32>
    %c0_28 = arith.constant 0 : index
    %63 = memref.load %arg4[%c0_28] : memref<2xf32, #tpu.memory_space<smem>>
    %64 = vector.broadcast %63 : f32 to vector<1x128xf32>
    %65 = arith.addf %62, %64 : vector<1x128xf32>
    %c1_29 = arith.constant 1 : index
    %c0_30 = arith.constant 0 : index
    %66 = memref.load %arg3[%c1_29, %c0_30] : memref<2x3xf32, #tpu.memory_space<smem>>
    %67 = vector.broadcast %66 : f32 to vector<1x128xf32>
    %68 = arith.mulf %67, %47 : vector<1x128xf32>
    %c1_31 = arith.constant 1 : index
    %c1_32 = arith.constant 1 : index
    %69 = memref.load %arg3[%c1_31, %c1_32] : memref<2x3xf32, #tpu.memory_space<smem>>
    %70 = vector.broadcast %69 : f32 to vector<1x128xf32>
    %71 = arith.mulf %70, %49 : vector<1x128xf32>
    %72 = arith.addf %68, %71 : vector<1x128xf32>
    %c1_33 = arith.constant 1 : index
    %c2_34 = arith.constant 2 : index
    %73 = memref.load %arg3[%c1_33, %c2_34] : memref<2x3xf32, #tpu.memory_space<smem>>
    %74 = vector.broadcast %73 : f32 to vector<1x128xf32>
    %75 = arith.mulf %74, %51 : vector<1x128xf32>
    %76 = arith.addf %72, %75 : vector<1x128xf32>
    %c1_35 = arith.constant 1 : index
    %77 = memref.load %arg4[%c1_35] : memref<2xf32, #tpu.memory_space<smem>>
    %78 = vector.broadcast %77 : f32 to vector<1x128xf32>
    %79 = arith.addf %76, %78 : vector<1x128xf32>
    %80 = arith.maximumf %65, %79 : vector<1x128xf32>
    %81 = arith.subf %65, %80 : vector<1x128xf32>
    %82 = math.exp %81 : vector<1x128xf32>
    %83 = arith.subf %79, %80 : vector<1x128xf32>
    %84 = math.exp %83 : vector<1x128xf32>
    %85 = arith.addf %82, %84 : vector<1x128xf32>
    %86 = tpu.reciprocal %85 : vector<1x128xf32> -> vector<1x128xf32>
    %87 = arith.mulf %82, %86 : vector<1x128xf32>
    %88 = arith.mulf %84, %86 : vector<1x128xf32>
    %89 = tpu.concatenate %87, %88 in 0 : vector<1x128xf32>, vector<1x128xf32> -> vector<2x128xf32>
    %c0_36 = arith.constant 0 : index
    %c0_37 = arith.constant 0 : index
    %90 = vector.load %arg6[%c0_36, %c0_37] : memref<2x128xf32, #tpu.memory_space<vmem>>, vector<2x128xf32>
    tpu.vector_store %arg6[%c0_36, %c0_37], %89 {strides = array<i32>} : memref<2x128xf32, #tpu.memory_space<vmem>>, vector<2x128xf32>,
    return
  }
  func.func @transform_0(%arg0: i32) -> (i32, i32) {
    %c0_i32 = arith.constant 0 : i32
    %c0_i32_0 = arith.constant 0 : i32
    %c0_i32_1 = arith.constant 0 : i32
    return %c0_i32, %c0_i32_0 : i32, i32
  }
  func.func @transform_1(%arg0: i32) -> i32 {
    %c0_i32 = arith.constant 0 : i32
    %c0_i32_0 = arith.constant 0 : i32
    return %c0_i32 : i32
  }
  func.func @transform_2(%arg0: i32) -> (i32, i32) {
    %c0_i32 = arith.constant 0 : i32
    %c0_i32_0 = arith.constant 0 : i32
    %c0_i32_1 = arith.constant 0 : i32
    return %c0_i32, %c0_i32_0 : i32, i32
  }
  func.func @transform_3(%arg0: i32) -> i32 {
    %c0_i32 = arith.constant 0 : i32
    %c0_i32_0 = arith.constant 0 : i32
    return %c0_i32 : i32
  }
  func.func @transform_4(%arg0: i32) -> (i32, i32) {
    %c0_i32 = arith.constant 0 : i32
    %c0_i32_0 = arith.constant 0 : i32
    return %c0_i32, %arg0 : i32, i32
  }
  func.func @transform_5(%arg0: i32) -> (i32, i32) {
    %c0_i32 = arith.constant 0 : i32
    %c0_i32_0 = arith.constant 0 : i32
    return %c0_i32, %arg0 : i32, i32
  }
}

</mosaic_0001>

<bundles_post_ra>
// kernel: tpu_custom_call.1
= control target key start
LH: loop header
LB: loop body
LE: loop exit
PB: predicated region body
PF: predicated region fallthrough
CT: control target
= control target key end

     0   :  { %10 = vsyncpa [#allocation4], 0  ;;  %s391_s0 = inlined_call_operand.hbm [shape: f32[3,3], index: 0, kind: input, shape index: {}]   ;;  %s392_s1 = inlined_call_operand.vmem [shape: f32[3], index: 1, kind: input, shape index: {}]   ;;  %s393_s2 = inlined_call_operand.vmem [shape: f32[2,3], index: 2, kind: input, shape index: {}]   ;;  %s394_s3 = inlined_call_operand.vmem [shape: f32[2], index: 3, kind: input, shape index: {}]   ;;  %s395_s4 = inlined_call_operand.vmem [shape: f32[3,128], index: 4, kind: input, shape index: {}]   ;;  %s396_s5 = inlined_call_operand.hbm [shape: f32[2,128], index: 5, kind: output, shape index: {}]  }
   0x1   :  { %11 = vsyncpa [#allocation5], 0 }
   0x2   :  { %12 = vsyncpa [#allocation8], 0  ;;  %s38_s20 = sshll.u32 %s393_s2, 4  ;;  %s39_s20 = int_to_ptr.vmem [resolvable:$true] %s38_s20 }
   0x3   :  { %13 = vsyncpa [#allocation3], 0  ;;  %s220_s21 = scalar_lea.vmem %s39_s20, 32  ;;  %p225_p1 = scmp.lt.s32.totalorder %s39_s20, %s39_s20 }
   0x4   :  { %p221_p0 = scmp.ne.s32.totalorder %s39_s20, %s220_s21  ;;  %p226_p2 = scmp.lt.s32.totalorder %s220_s21, %s220_s21 }
   0x6   :  { %p227_p3 = por %p226_p2, %p225_p1 }
   0x8   :  { %p228_p4 = pnand %p227_p3, %p221_p0 }
   0xa   :  { %231 = shalt.err (!%p228_p4)
}
   0xb   :  { %s296_s22 = smov [#allocation7]   ;;  %s232_s25 = scalar_lea.hbm %s391_s0, 64 }
   0xc   :  { %41 = dma.vmem_to_smem %s39_s20, 32, %s296_s22, [#allocation8]  }
   0xd   :  { %p233_p5 = scmp.ne.s32.totalorder %s391_s0, %s232_s25  ;;  %p236_p6 = scmp.lt.u32.totalorder %s232_s25, %s391_s0 }
   0xf   :  { %p238_p7 = pnand %p236_p6, %p233_p5 }
  0x11   :  { %241 = shalt.err (!%p238_p7)
}
  0x12   :  { %s297_s29 = smov [#allocation2]   ;;  %s28_s9 = sshll.u32 %s392_s1, 4  ;;  %s29_s9 = int_to_ptr.vmem [resolvable:$true] %s28_s9 }
  0x13   :  { %21 = dma.hbm_to_smem %s391_s0, 64, %s297_s29, [#allocation4]  }
  0x14   :  { %s48_s12 = sshll.u32 %s394_s3, 4  ;;  %s242_s13 = scalar_lea.vmem %s29_s9, 16  ;;  %s49_s12 = int_to_ptr.vmem [resolvable:$true] %s48_s12 }
  0x15   :  { %p243_p8 = scmp.ne.s32.totalorder %s29_s9, %s242_s13  ;;  %p247_p9 = scmp.lt.s32.totalorder %s29_s9, %s29_s9 }
  0x16   :  { %p248_p10 = scmp.lt.s32.totalorder %s242_s13, %s242_s13 }
  0x18   :  { %p249_p11 = por %p248_p10, %p247_p9 }
  0x1a   :  { %p250_p12 = pnand %p249_p11, %p243_p8 }
  0x1c   :  { %253 = shalt.err (!%p250_p12)
}
  0x1d   :  { %s298_s14 = smov [#allocation6]   ;;  %s254_s0 = scalar_lea.vmem %s49_s12, 16 }
  0x1e   :  { %31 = dma.vmem_to_smem %s29_s9, 16, %s298_s14, [#allocation5]  }
  0x1f   :  { %p255_p13 = scmp.ne.s32.totalorder %s49_s12, %s254_s0  ;;  %p259_p0 = scmp.lt.s32.totalorder %s49_s12, %s49_s12 }
  0x20   :  { %p260_p1 = scmp.lt.s32.totalorder %s254_s0, %s254_s0 }
  0x22   :  { %p261_p2 = por %p260_p1, %p259_p0 }
  0x24   :  { %p262_p3 = pnand %p261_p2, %p255_p13 }
  0x26   :  { %265 = shalt.err (!%p262_p3)
}
  0x27   :  { %s299_s1 = smov [#allocation9]  }
  0x28   :  { %51 = dma.vmem_to_smem %s49_s12, 16, %s299_s1, [#allocation8]  }
  0x29   :  { %288 = dma.done.wait [#allocation4], 64  }
  0x2a   :  { %289 = vsyncadd [#allocation4], 4294967232 }
  0x2b   :  { %290 = dma.done.wait [#allocation5], 16  }
  0x2c   :  { %291 = vsyncadd [#allocation5], 4294967280 }
  0x2d   :  { %292 = dma.done.wait [#allocation8], 48  }
  0x2e   :  { %293 = vsyncadd [#allocation8], 4294967248 }
  0x2f   :  { %66 = sfence }
  0x30   :  { %s68_s3 = sld [smem:[#allocation2]]  ;;  %s193_s15 = sld [smem:[#allocation2 + $0x1]]  ;;  %v67_v0 = vld [vmem:[%s395_s4] sm:$0x7]  ;;  %vm173_vm0 = vcmask 1040384  }
  0x31   :  { %s194_s16 = sld [smem:[#allocation2 + $0x2]]  ;;  %s195_s17 = sld [smem:[#allocation2 + $0x80]] }
  0x32   :  { %s196_s18 = sld [smem:[#allocation2 + $0x81]]  ;;  %s352_s19 = sld [smem:[#allocation6]] }
  0x33   :  { %s197_s20 = sld [smem:[#allocation2 + $0x82]]  ;;  %s199_s23 = sld [smem:[#allocation2 + $0x100]] }
  0x34   :  { %s200_s24 = sld [smem:[#allocation2 + $0x101]]  ;;  %s357_s25 = sld [smem:[#allocation2 + $0x102]] }
  0x35   :  { %s359_s26 = sld [smem:[#allocation6 + $0x1]]  ;;  %s361_s27 = sld [smem:[#allocation7]] }
  0x36   :  { %v69_v1 = vstv %s68_s3  ;;  %v72_v2 = vstv %s193_s15  ;;  %s363_s2 = sld [smem:[#allocation7 + $0x80]]  ;;  %s365_s4 = sld [smem:[#allocation6 + $0x2]] }
  0x37   :  { %v70_v3 = vmul.f32 %v69_v1, %v67_v0  ;;  %v73_v4 = vmul.f32 %v72_v2, %v67_v0  ;;  %v79_v5 = vstv %s194_s16  ;;  %v89_v7 = vstv %s195_s17  ;;  %s367_s28 = sld [smem:[#allocation7 + $0x1]]  ;;  %s204_s30 = sld [smem:[#allocation7 + $0x2]] }
  0x38   :  { %v80_v6 = vmul.f32 %v79_v5, %v67_v0  ;;  %v92_v8 = vstv %s196_s18  ;;  %v90_v10 = vmul.f32 %v89_v7, %v67_v0  ;;  %s369_s29 = sld [smem:[#allocation7 + $0x81]]  ;;  %v86_v17 = vstv %s352_s19  ;;  %s207_s6 = sld [smem:[#allocation7 + $0x82]] }
  0x39   :  { %v75_v9 = vrot.slane %v73_v4, 1  ;;  %v93_v11 = vmul.f32 %v92_v8, %v67_v0  ;;  %v99_v12 = vstv %s197_s20  ;;  %v109_v15 = vstv %s199_s23  ;;  %s142_s7 = sld [smem:[#allocation9]]  ;;  %s208_s8 = sld [smem:[#allocation9 + $0x1]] }
  0x3a   :  { %v82_v13 = vrot.slane %v80_v6, 2  ;;  %v100_v14 = vmul.f32 %v99_v12, %v67_v0  ;;  %v112_v19 = vstv %s200_s24  ;;  %v110_v21 = vmul.f32 %v109_v15, %v67_v0  ;;  %s300_s9 = smov [#allocation10]  }
  0x3b   :  { %v77_v16 = vadd.f32 %v75_v9, %v70_v3  ;;  %v95_v18 = vrot.slane %v93_v11, 1  ;;  %v113_v22 = vmul.f32 %v112_v19, %v67_v0  ;;  %v119_v23 = vstv %s357_s25  ;;  %s182_s10 = sshll.u32 %s300_s9, 4  ;;  %s183_s10 = int_to_ptr.vmem [resolvable:$true] %s182_s10 }
  0x3c   :  { %v102_v20 = vrot.slane %v100_v14, 2  ;;  %v120_v26 = vmul.f32 %v119_v23, %v67_v0  ;;  %v106_v27 = vstv %s359_s26  ;;  %v132_v33 = vstv %s361_s27  ;;  %s266_s11 = scalar_lea.vmem %s183_s10, 32  ;;  %p271_p5 = scmp.lt.s32.totalorder %s183_s10, %s183_s10 }
  0x3d   :  { %v84_v24 = vadd.f32 %v82_v13, %v77_v16  ;;  %v97_v25 = vadd.f32 %v95_v18, %v90_v10  ;;  %v115_v28 = vrot.slane %v113_v22, 1  ;;  %v146_v34 = vstv %s363_s2  ;;  %p267_p4 = scmp.ne.s32.totalorder %s183_s10, %s266_s11  ;;  %p272_p6 = scmp.lt.s32.totalorder %s266_s11, %s266_s11 }
  0x3e   :  { %v122_v31 = vrot.slane %v120_v26, 2  ;;  %v126_v36 = vstv %s365_s4  ;;  %v135_v39 = vstv %s367_s28  ;;  %v149_v40 = vstv %s369_s29 }
  0x3f   :  { %v87_v29 = vadd.f32 %v86_v17, %v84_v24  ;;  %v104_v30 = vadd.f32 %v102_v20, %v97_v25  ;;  %v117_v32 = vadd.f32 %v115_v28, %v110_v21  ;;  %v139_v46 = vstv %s204_s30  ;;  %p273_p7 = por %p272_p6, %p271_p5 }
  0x40   :  { %v153_v48 = vstv %s207_s6  ;;  %v143_v54 = vstv %s142_s7  ;;  %v157_v55 = vstv %s208_s8 }
  0x41   :  { %v107_v35 = vadd.f32 %v106_v27, %v104_v30  ;;  %v128_v37 = vmax.f32 %v87_v29, 0.0  ;;  %v124_v38 = vadd.f32 %v122_v31, %v117_v32  ;;  %p274_p8 = pnand %p273_p7, %p267_p4 }
  0x43   :  { %v129_v41 = vmax.f32 %v107_v35, 0.0  ;;  %v133_v42 = vmul.f32 %v132_v33, %v128_v37  ;;  %v147_v43 = vmul.f32 %v146_v34, %v128_v37  ;;  %v127_v44 = vadd.f32 %v126_v36, %v124_v38 }
  0x45   :  { %v136_v45 = vmul.f32 %v135_v39, %v129_v41  ;;  %v150_v47 = vmul.f32 %v149_v40, %v129_v41  ;;  %v130_v49 = vmax.f32 %v127_v44, 0.0 }
  0x47   :  { %v137_v50 = vadd.f32 %v136_v45, %v133_v42  ;;  %v151_v51 = vadd.f32 %v150_v47, %v147_v43  ;;  %v140_v52 = vmul.f32 %v139_v46, %v130_v49  ;;  %v154_v53 = vmul.f32 %v153_v48, %v130_v49 }
  0x49   :  { %v141_v56 = vadd.f32 %v140_v52, %v137_v50  ;;  %v155_v57 = vadd.f32 %v154_v53, %v151_v51 }
  0x4b   :  { %v144_v58 = vadd.f32 %v143_v54, %v141_v56  ;;  %v158_v59 = vadd.f32 %v157_v55, %v155_v57 }
  0x4d   :  { %v159_v60 = vmax.f32 %v144_v58, %v158_v59 }
  0x4f   :  { %v160_v61 = vsub.f32 %v144_v58, %v159_v60  ;;  %v163_v62 = vsub.f32 %v158_v59, %v159_v60 }
  0x51   :  { %v161_v63 = vmul.f32 1.442695, %v160_v61  ;;  %v164_v0 = vmul.f32 1.442695, %v163_v62 }
  0x53   :  { %214 = vpow2.f32 %v161_v63 }
  0x54   :  { %216 = vpow2.f32 %v164_v0 }
  0x5d   :  { %v215_v1 = vpop.eup %214 }
  0x5e   :  { %v217_v2 = vpop.eup %216 }
  0x5f   :  { %v166_v3 = vadd.f32 %v217_v2, %v215_v1 }
  0x61   :  { %218 = vrcp.f32 %v166_v3 }
  0x6b   :  { %v219_v4 = vpop.eup %218 }
  0x6c   :  { %v168_v5 = vmul.f32 %v219_v4, %v215_v1  ;;  %v169_v6 = vmul.f32 %v219_v4, %v217_v2 }
  0x6e   :  { %v171_v7 = vrot.slane %v169_v6, 7 }
  0x70   :  { %v174_v8 = vsel %vm173_vm0, %v168_v5, %v171_v7 }
  0x71   :  { %175 = vst [vmem:[#allocation10] sm:$0x3] %v174_v8 }
  0x72   :  { %277 = shalt.err (!%p274_p8)
}
  0x73   :  { %s278_s14 = scalar_lea.hbm %s396_s5, 32 }
  0x74   :  { %p279_p9 = scmp.ne.s32.totalorder %s396_s5, %s278_s14  ;;  %p282_p10 = scmp.lt.u32.totalorder %s278_s14, %s396_s5 }
  0x76   :  { %p284_p11 = pnand %p282_p10, %p279_p9 }
  0x78   :  { %287 = shalt.err (!%p284_p11)
}
  0x79   :  { %185 = dma.vmem_to_hbm [thread:$0]  %s183_s10, 32, %s396_s5, [#allocation3]  }
  0x7a   :  { %294 = dma.done.wait [#allocation3], 32  }
  0x7b   :  { %295 = vsyncadd [#allocation3], 4294967264 }
  0x7c   :  { %189 = vsyncpa [#allocation3], 1 }
  0x7d   :  { %190 = vsyncpa [#allocation4], 1 }
  0x7e   :  { %191 = vsyncpa [#allocation5], 1 }
  0x7f   :  { %192 = vsyncpa [#allocation8], 1 }

</bundles_post_ra>
